<compile_context>
chip_gen: v7x
topology: tpu7x:2x2x1
jax: 0.10.0
libtpu: 0.0.40
codegen_flags: <defaults>
</compile_context>

<pallas_src>
from collections import defaultdict

import jax
import jax.numpy as jnp
import numpy as np
from jax.experimental import pallas as pl
from jax.experimental.pallas import tpu as pltpu


_MAX_LAYER_BLOCK = 8          # keep the static in-kernel unroll over layers small
_MIB = 1024 * 1024


def _round_up(x, m):
    return ((x + m - 1) // m) * m


def _vmem_capacity_bytes():
    """Physical VMEM of the current chip; conservative fallback if unavailable."""
    try:
        return int(pltpu.get_tpu_info().vmem_capacity_bytes)
    except Exception:
        return 64 * _MIB       # v7x-safe fallback


def _probe_kernel(hs_ref, avg_ref, wt_ref, out_ref):
    """One grid step processes `lb` layers.

    hs_ref : (lb, T, D)   native dtype (f32 or bf16) hidden states, pipelined HBM tile
    avg_ref: (Wp, T)      bf16 sub-token averaging matrix (resident across the grid)
    wt_ref : (D,  Rp)     bf16 probe weight, pre-transposed in the wrapper (resident)
    out_ref: (lb, Wp, Rp) f32
    """
    lb = hs_ref.shape[0]

    # Hoisted resident loads (not re-read per layer).
    avg = avg_ref[...]                                   # (Wp, T)  bf16
    wt = wt_ref[...]                                     # (D, Rp)  bf16

    # lb is a small static constant -> fully unrolled straight-line code.
    for l in range(lb):
        h = hs_ref[l]                                    # (T, D)
        if h.dtype != wt.dtype:
            # In-VMEM cast (VPU) right before the dot; avoids an extra HBM pass
            # compared to casting the whole (L, T, D) tensor in the wrapper.
            h = h.astype(wt.dtype)

        # (1) Sub-token averaging: (Wp, T) x (T, D) bf16 MXU matmul, f32 accumulation.
        aw = jnp.dot(avg, h, preferred_element_type=jnp.float32)          # (Wp, D) f32

        # (2) Probe linear: (Wp, D) x (D, Rp), stored directly into this layer's slice
        #     of the output tile (no concat, no trailing reshape).
        out_ref[l] = jnp.dot(aw.astype(wt.dtype), wt,
                             preferred_element_type=jnp.float32).astype(out_ref.dtype)


def _pick_layer_block(L, T, D, Wp, Rp, hs_itemsize, budget_bytes):
    """Pick layers-per-grid-step `lb` as an exact divisor of L (no padded/dead layers),
    the largest one that fits the VMEM budget, preferring an even number of grid steps
    (>= 2) so v7x's two TensorCores get balanced work on the parallel layer axis."""
    resident = 2 * (Wp * T + D * Rp) * 2                 # bf16 avg + weight, double-buffered

    def footprint(lb):
        hs = 2 * lb * T * D * hs_itemsize                # double-buffered hidden-state tile
        out = 2 * lb * Wp * Rp * 4                       # double-buffered f32 output tile
        interm = lb * (Wp * D * 4 + T * D * 2)           # per-layer f32 intermediate + bf16 cast
        return resident + hs + out + interm

    divisors = [d for d in range(1, min(L, _MAX_LAYER_BLOCK) + 1) if L % d == 0]
    feasible = [d for d in divisors if footprint(d) <= budget_bytes] or [1]
    multi = [d for d in feasible if L // d >= 2]                 # keep >= 2 grid steps
    even = [d for d in multi if (L // d) % 2 == 0]               # balanced across 2 TCs (v7x)
    pool = even or multi or feasible
    return max(pool)


def polar_probe_forward(hidden_states, avg_matrix, probe_weight,
                        *, compute_dtype=jnp.bfloat16):
    """hidden_states: (L, T, D), avg_matrix: (W, T), probe_weight: (R, D) -> (L, W, R) f32.

    hidden_states is consumed in its native dtype (no wrapper-side re-materialization);
    the bf16 cast for the MXU happens per-tile inside the kernel.
    """
    L, T, D = hidden_states.shape
    Wn = avg_matrix.shape[0]
    R = probe_weight.shape[0]

    # Alignment padding on the tiny resident operands / output only (never on hidden_states):
    #   W -> multiple of 8 (sublane), R -> multiple of 128 (lane-dense output stores).
    Wp = _round_up(Wn, 8)
    Rp = _round_up(R, 128)

    avg = avg_matrix.astype(compute_dtype)
    if Wp != Wn:
        avg = jnp.pad(avg, ((0, Wp - Wn), (0, 0)))
    w_t = probe_weight.T.astype(compute_dtype)           # (D, R): one-time wrapper transpose
    if Rp != R:
        w_t = jnp.pad(w_t, ((0, 0), (0, Rp - R)))

    # Generation-aware VMEM budgeting (v5e/v6e: 128 MiB physical; v7x: 64 MiB).
    vmem_cap = _vmem_capacity_bytes()
    vmem_limit = min(vmem_cap * 3 // 4, 100 * _MIB)      # ~48 MiB on v7x, ~96 MiB on v5e/v6e
    tile_budget = max(vmem_limit - 12 * _MIB, 16 * _MIB)

    hs_itemsize = jnp.dtype(hidden_states.dtype).itemsize
    lb = _pick_layer_block(L, T, D, Wp, Rp, hs_itemsize, tile_budget)
    n_blocks = L // lb

    out = pl.pallas_call(
        _probe_kernel,
        out_shape=jax.ShapeDtypeStruct((L, Wp, Rp), jnp.float32),
        grid_spec=pltpu.PrefetchScalarGridSpec(
            num_scalar_prefetch=0,
            grid=(n_blocks,),
            in_specs=[
                pl.BlockSpec((lb, T, D), lambda i: (i, 0, 0)),   # pipelined per-block layers
                pl.BlockSpec((Wp, T), lambda i: (0, 0)),         # resident averaging matrix
                pl.BlockSpec((D, Rp), lambda i: (0, 0)),         # resident probe weight (D, Rp)
            ],
            out_specs=pl.BlockSpec((lb, Wp, Rp), lambda i: (i, 0, 0)),
        ),
        compiler_params=pltpu.CompilerParams(
            dimension_semantics=("parallel",),
            vmem_limit_bytes=int(vmem_limit),
        ),
    )(hidden_states, avg, w_t)

    # Strip the alignment padding (layout plumbing only; no kernel cost).
    return out[:, :Wn, :R]


def build_avg_matrix(mapping, num_words, num_tokens, dtype=jnp.float32):
    """Dense (words x tokens) matrix replicating Model._avg_subtokens."""
    A = np.zeros((num_words, num_tokens), dtype=np.float32)
    for w in range(num_words):
        start = mapping[w][0]
        end = mapping[w][-1] + 1
        span = end - start
        A[w, start:end] = 1.0 / span
    return jnp.asarray(A, dtype=dtype)


if __name__ == "__main__":
    key = jax.random.PRNGKey(0)
    k_hs, k_w = jax.random.split(key)

    # Small stand-in shapes consistent with the module: L layers of hidden states,
    # T sub-tokens, D = llm_dim, W words after sub-token merging, R = probe rank ('rank' mode).
    L, T, D = 4, 16, 32
    R = 16

    # Synthetic LLM hidden states (stand-in for torch.cat(outputs.hidden_states, dim=0)).
    hidden_states = jax.random.normal(k_hs, (L, T, D), dtype=jnp.float32)

    # Deterministic BERT-style sub-token mapping: token 0 is [CLS]; words own 1-3 sub-tokens.
    spans = [1, 2, 1, 3, 1, 2, 1, 2]   # 13 sub-tokens used (tokens 1..13)
    mapping = defaultdict(list)
    tok_idx = 1
    for w, s in enumerate(spans):
        for _ in range(s):
            mapping[w].append(tok_idx)
            tok_idx += 1
    W_words = len(spans)

    avg_matrix = build_avg_matrix(mapping, W_words, T)

    # PolarProbe.linear weight: nn.Linear(D, R, bias=False), init uniform(-1e-5, 1e-5).
    probe_weight = jax.random.uniform(k_w, (R, D), minval=-1e-5, maxval=1e-5,
                                      dtype=jnp.float32)

    out = polar_probe_forward(hidden_states, avg_matrix, probe_weight)
    out = jax.block_until_ready(out)

    # Precision-matched pure-JAX reference (same bf16 casts, f32 accumulation),
    # mirroring _avg_subtokens + PolarProbe.forward.
    hs_b = hidden_states.astype(jnp.bfloat16)
    avg_b = avg_matrix.astype(jnp.bfloat16)
    w_b = probe_weight.T.astype(jnp.bfloat16)                      # (D, R)
    avg_act = jnp.einsum("wt,ltd->lwd", avg_b, hs_b,
                         preferred_element_type=jnp.float32)       # (L, W, D) f32
    ref = jnp.einsum("lwd,dr->lwr", avg_act.astype(jnp.bfloat16), w_b,
                     preferred_element_type=jnp.float32)           # (L, W, R) f32

    assert out.shape == (L, W_words, R)
    assert not bool(jnp.isnan(out).any())
    # Relative tolerance dominates (outputs are ~1e-5-scale because of the probe init);
    # tiny atol only covers accumulation-order differences on near-cancelling sums.
    assert jnp.allclose(out, ref, rtol=5e-3, atol=1e-8)

    print("KERNEL_OK")
</pallas_src>

<mosaic_0001>
module attributes {stable_mosaic.version = 11 : i64} {
  func.func @_probe_kernel(%arg0: i32, %arg1: memref<2x16x32xf32, #tpu.memory_space<vmem>>, %arg2: memref<8x16xbf16, #tpu.memory_space<vmem>>, %arg3: memref<32x128xbf16, #tpu.memory_space<vmem>>, %arg4: memref<2x8x128xf32, #tpu.memory_space<vmem>>) attributes {dimension_semantics = [#tpu.dimension_semantics<parallel>], iteration_bounds = array<i64: 2>, scalar_prefetch = 0 : i64, scratch_operands = 0 : i64, tpu.core_type = #tpu.core_type<tc>, window_params = [{transform_indices = @transform_0, window_bounds = array<i64: 2, 16, 32>}, {pipeline_mode = #tpu.pipeline_mode<synchronous>, transform_indices = @transform_1, window_bounds = array<i64: 8, 16>}, {pipeline_mode = #tpu.pipeline_mode<synchronous>, transform_indices = @transform_2, window_bounds = array<i64: 32, 128>}, {transform_indices = @transform_3, window_bounds = array<i64: 2, 8, 128>}]} {
    %c0 = arith.constant 0 : index
    %c0_0 = arith.constant 0 : index
    %0 = vector.load %arg2[%c0, %c0_0] : memref<8x16xbf16, #tpu.memory_space<vmem>>, vector<8x16xbf16>
    %c0_1 = arith.constant 0 : index
    %c0_2 = arith.constant 0 : index
    %1 = vector.load %arg3[%c0_1, %c0_2] : memref<32x128xbf16, #tpu.memory_space<vmem>>, vector<32x128xbf16>
    %c0_3 = arith.constant 0 : index
    %c0_4 = arith.constant 0 : index
    %c0_5 = arith.constant 0 : index
    %2 = vector.load %arg1[%c0_3, %c0_4, %c0_5] : memref<2x16x32xf32, #tpu.memory_space<vmem>>, vector<1x16x32xf32>
    %3 = vector.shape_cast %2 : vector<1x16x32xf32> to vector<16x32xf32>
    %4 = arith.truncf %3 : vector<16x32xf32> to vector<16x32xbf16>
    %cst = arith.constant dense<0.000000e+00> : vector<8x32xf32>
    %5 = tpu.matmul %0, %4, %cst {dimension_numbers = #tpu.dot_dimension_numbers<[1], [0], [0], [1], [0, 0, 1, 1], [], []>} : vector<8x16xbf16>, vector<16x32xbf16>, vector<8x32xf32> -> vector<8x32xf32>
    %6 = arith.truncf %5 : vector<8x32xf32> to vector<8x32xbf16>
    %cst_6 = arith.constant dense<0.000000e+00> : vector<8x128xf32>
    %7 = tpu.matmul %6, %1, %cst_6 {dimension_numbers = #tpu.dot_dimension_numbers<[1], [0], [0], [1], [0, 0, 1, 1], [], []>} : vector<8x32xbf16>, vector<32x128xbf16>, vector<8x128xf32> -> vector<8x128xf32>
    %c0_7 = arith.constant 0 : index
    %c0_8 = arith.constant 0 : index
    %c0_9 = arith.constant 0 : index
    %8 = vector.load %arg4[%c0_7, %c0_8, %c0_9] : memref<2x8x128xf32, #tpu.memory_space<vmem>>, vector<1x8x128xf32>
    %9 = vector.shape_cast %8 : vector<1x8x128xf32> to vector<8x128xf32>
    %10 = vector.shape_cast %7 : vector<8x128xf32> to vector<1x8x128xf32>
    tpu.vector_store %arg4[%c0_7, %c0_8, %c0_9], %10 {strides = array<i32>} : memref<2x8x128xf32, #tpu.memory_space<vmem>>, vector<1x8x128xf32>,
    %c1 = arith.constant 1 : index
    %c0_10 = arith.constant 0 : index
    %c0_11 = arith.constant 0 : index
    %11 = vector.load %arg1[%c1, %c0_10, %c0_11] : memref<2x16x32xf32, #tpu.memory_space<vmem>>, vector<1x16x32xf32>
    %12 = vector.shape_cast %11 : vector<1x16x32xf32> to vector<16x32xf32>
    %13 = arith.truncf %12 : vector<16x32xf32> to vector<16x32xbf16>
    %cst_12 = arith.constant dense<0.000000e+00> : vector<8x32xf32>
    %14 = tpu.matmul %0, %13, %cst_12 {dimension_numbers = #tpu.dot_dimension_numbers<[1], [0], [0], [1], [0, 0, 1, 1], [], []>} : vector<8x16xbf16>, vector<16x32xbf16>, vector<8x32xf32> -> vector<8x32xf32>
    %15 = arith.truncf %14 : vector<8x32xf32> to vector<8x32xbf16>
    %cst_13 = arith.constant dense<0.000000e+00> : vector<8x128xf32>
    %16 = tpu.matmul %15, %1, %cst_13 {dimension_numbers = #tpu.dot_dimension_numbers<[1], [0], [0], [1], [0, 0, 1, 1], [], []>} : vector<8x32xbf16>, vector<32x128xbf16>, vector<8x128xf32> -> vector<8x128xf32>
    %c1_14 = arith.constant 1 : index
    %c0_15 = arith.constant 0 : index
    %c0_16 = arith.constant 0 : index
    %17 = vector.load %arg4[%c1_14, %c0_15, %c0_16] : memref<2x8x128xf32, #tpu.memory_space<vmem>>, vector<1x8x128xf32>
    %18 = vector.shape_cast %17 : vector<1x8x128xf32> to vector<8x128xf32>
    %19 = vector.shape_cast %16 : vector<8x128xf32> to vector<1x8x128xf32>
    tpu.vector_store %arg4[%c1_14, %c0_15, %c0_16], %19 {strides = array<i32>} : memref<2x8x128xf32, #tpu.memory_space<vmem>>, vector<1x8x128xf32>,
    return
  }
  func.func @transform_0(%arg0: i32) -> (i32, i32, i32) {
    %c0_i32 = arith.constant 0 : i32
    %c0_i32_0 = arith.constant 0 : i32
    %c0_i32_1 = arith.constant 0 : i32
    return %arg0, %c0_i32, %c0_i32_0 : i32, i32, i32
  }
  func.func @transform_1(%arg0: i32) -> (i32, i32) {
    %c0_i32 = arith.constant 0 : i32
    %c0_i32_0 = arith.constant 0 : i32
    %c0_i32_1 = arith.constant 0 : i32
    return %c0_i32, %c0_i32_0 : i32, i32
  }
  func.func @transform_2(%arg0: i32) -> (i32, i32) {
    %c0_i32 = arith.constant 0 : i32
    %c0_i32_0 = arith.constant 0 : i32
    %c0_i32_1 = arith.constant 0 : i32
    return %c0_i32, %c0_i32_0 : i32, i32
  }
  func.func @transform_3(%arg0: i32) -> (i32, i32, i32) {
    %c0_i32 = arith.constant 0 : i32
    %c0_i32_0 = arith.constant 0 : i32
    %c0_i32_1 = arith.constant 0 : i32
    return %arg0, %c0_i32, %c0_i32_0 : i32, i32, i32
  }
}

</mosaic_0001>

<bundles_post_ra>
// kernel: tpu_custom_call.1
= control target key start
LH: loop header
LB: loop body
LE: loop exit
PB: predicated region body
PF: predicated region fallthrough
CT: control target
= control target key end

     0   :  { %8 = vsyncpa [#allocation3], 0  ;;  %s1098_s0 = inlined_call_operand.hbm [shape: f32[4,16,32], index: 0, kind: input, shape index: {}]   ;;  %s1099_s1 = inlined_call_operand.hbm [shape: bf16[8,16], index: 1, kind: input, shape index: {}]   ;;  %s1100_s2 = inlined_call_operand.hbm [shape: bf16[32,128], index: 2, kind: input, shape index: {}]   ;;  %s1101_s3 = inlined_call_operand.hbm [shape: f32[4,8,128], index: 3, kind: output, shape index: {}]  }
   0x1   :  { %10 = vsyncpa [#allocation3 + $0x1], 0 }
   0x2   :  { %11 = vsyncpa [#allocation6], 0 }
   0x3   :  { %12 = vsyncpa [#allocation4], 0 }
   0x4   :  { %14 = vsyncpa [#allocation4 + $0x1], 0  ;;  %s862_s12 = smov 0   ;;  %s864_s13 = smov 0  }
   0x5   :  { %s866_s14 = smov 0   ;;  %s868_s15 = smov 0  }
   0x6 LB: > { %s883_s16 = sadd.s32 4294967295, %s828_s15   ;;  %s526_s17 = sadd.s32 4294967294, %s828_s15   ;;  %s828_s15 = sphi %s868_s15, %s1126_s15   ;;  %s824_s14 = sphi %s866_s14, %s1125_s14   ;;  %s820_s13 = sphi %s864_s13, %s1124_s13   ;;  %s816_s12 = sphi %s862_s12, %s1123_s12  }
   0x7   : > { %s887_s18 = sadd.s32 1, %s828_s15   ;;  %s27_s19 = sadd.s32 1, %s824_s14 }
   0x8   : > { %s24_s20 = ssub.s32 %s828_s15, %s887_s18  ;;  %p34_p0 = scmp.ne.s32.totalorder %s824_s14, %s820_s13 }
   0x9   : > { %p25_p1 = scmp.eq.s32.totalorder %s24_s20, 0  ;;  %p35_p2 = scmp.eq.s32.totalorder %s828_s15, 0 }
   0xa   : > { %p40_p3 = scmp.ne.s32.totalorder %s820_s13, %s816_s12  ;;  %p1102_p4 = scmp.eq.s32.totalorder %s883_s16, 0 }
   0xb   : > { %s899_s21 = scalar_select %p25_p1, %s824_s14, %s27_s19  }
   0xc   : > { %p901_p5 = por %p35_p2, %p34_p0  ;;  %p907_p6 = por %p1102_p4, %p40_p3 }
   0xd   : > { %p106_p7 = scmp.eq.s32.totalorder %s883_s16, 1  ;;  %p112_p8 = scmp.eq.s32.totalorder %s526_s17, 1 }
   0xe   : > { %s1108_s23 = scalar_select %p907_p6, 1, 0 }
   0xf   : > { %p527_p9 = scmp.ge.s32.totalorder %s828_s15, 1  ;;  %p119_p10 = scmp.lt.s32.totalorder %s828_s15, 3 }
  0x10   : > { %p914_p11 = por %p106_p7, %p34_p0  ;;  %p918_p12 = por %p112_p8, %p40_p3 }
  0x11   : > { %p922_p13 = pnand %p527_p9, %p119_p10  ;;  %s830_s27 = smov [#allocation5]  }
  0x12   : > { %s1109_s24 = scalar_select %p914_p11, 1, 0 }
  0x13   : > { %s1110_s25 = scalar_select %p918_p12, 1, 0 }
  0x14   : > { %s1111_s26 = scalar_select %p922_p13, 1, 0 }
  0x15   : > { %p607_p2 = pneg %p922_p13  ;;  %s132_s28 = sshll.u32 %s830_s27, 4  ;;  %s133_s28 = int_to_ptr.vmem [resolvable:$true] %s132_s28 }
  0x16   : > { %p624_p4 = scmp.lt.s32.totalorder %s828_s15, 2  ;;  %p1112_p0 = scmp.eq.s32.totalorder %s883_s16, 0 }
  0x17   : > { %s831_s4 = smov [#allocation7]   ;;  %s672_s8 = scalar_lea.hbm %s1099_s1, 64 }
  0x18   : > { %p932_p7 = pnand %p607_p2, %p1112_p0  ;;  %p938_p3 = pnand %p624_p4, %p901_p5 }
  0x19   : > { %s142_s5 = sshll.u32 %s831_s4, 4  ;;  %p673_p8 = scmp.ne.s32.totalorder %s1099_s1, %s672_s8  ;;  %s942_s5 = int_to_ptr.vmem [resolvable:$true] %s142_s5 }
  0x1a   : > { %s1114_s30 = scalar_select %p938_p3, 1, 0 }
  0x1b   : > { %p674_p9 = pneg %p932_p7  ;;  %p679_p10 = scmp.lt.u32.totalorder %s672_s8, %s1099_s1 }
  0x1d   : > { %p675_p4 = pnand %p674_p9, %p673_p8 }
  0x1f   : > { %p676_p5 = pneg %p675_p4 }
  0x21   : > { %p681_p2 = pnand %p679_p10, %p676_p5 }
  0x23   : > { %684 = shalt.err (!%p681_p2)
}
  0x24   : > { %s685_s19 = scalar_lea.vmem %s133_s28, 64  ;;  %p693_p11 = scmp.lt.s32.totalorder %s133_s28, %s133_s28 }
  0x25   : > { %p686_p0 = scmp.ne.s32.totalorder %s133_s28, %s685_s19  ;;  %p694_p6 = scmp.lt.s32.totalorder %s685_s19, %s685_s19 }
  0x27   : > { %p688_p1 = pnand %p686_p0, %p674_p9  ;;  %p695_p13 = por %p694_p6, %p693_p11 }
  0x29   : > { %p689_p12 = pneg %p688_p1 }
  0x2b   : > { %p696_p3 = pnand %p695_p13, %p689_p12 }
  0x2d   : > { %699 = shalt.err (!%p696_p3)
}
  0x2e   : > { %610 = dma.hbm_to_vmem [thread:$0]  (!%p932_p7), %s1099_s1, 64, %s133_s28, [#allocation6]  }
  0x2f   : > { %s156_s27 = sand.u32 1, %s824_s14   ;;  %s700_s7 = scalar_lea.hbm %s1100_s2, 256 }
  0x30   : > { %p701_p1 = scmp.ne.s32.totalorder %s1100_s2, %s700_s7  ;;  %p707_p12 = scmp.lt.u32.totalorder %s700_s7, %s1100_s2 }
  0x32   : > { %p703_p6 = pnand %p701_p1, %p674_p9 }
  0x34   : > { %p704_p11 = pneg %p703_p6 }
  0x36   : > { %p709_p13 = pnand %p707_p12, %p704_p11 }
  0x38   : > { %712 = shalt.err (!%p709_p13)
}
  0x39   : > { %s713_s28 = scalar_lea.vmem %s942_s5, 256  ;;  %p721_p5 = scmp.lt.s32.totalorder %s942_s5, %s942_s5 }
  0x3a   : > { %p714_p3 = scmp.ne.s32.totalorder %s942_s5, %s713_s28  ;;  %p722_p10 = scmp.lt.s32.totalorder %s713_s28, %s713_s28 }
  0x3c   : > { %p716_p8 = pnand %p714_p3, %p674_p9  ;;  %p723_p2 = por %p722_p10, %p721_p5 }
  0x3e   : > { %p717_p4 = pneg %p716_p8 }
  0x40   : > { %p724_p0 = pnand %p723_p2, %p717_p4 }
  0x42   : > { %727 = shalt.err (!%p724_p0)
}
  0x43   : > { %s832_s17 = smov 64   ;;  %s833_s19 = smov 4  }
  0x44   : > { %613 = dma.hbm_to_vmem [thread:$0]  (!%p932_p7), %s1100_s2, 256, %s942_s5, [#allocation6], %s832_s17, %s832_s17, %s833_s19  }
  0x45   : > { %s531_s4 = sshll.u32 %s156_s27, 5  ;;  %s555_s6 = sshll.u32 %s828_s15, 9 }
  0x46   : > { %s996_s9 = scalar_lea.hbm %s1098_s0, %s555_s6  ;;  %s160_s10 = scalar_lea.vmem [#allocation2], %s531_s4 }
  0x47   : > { %s168_s11 = sshll.u32 %s160_s10, 4  ;;  %s1000_s29 = scalar_lea.sflag [#allocation3], %s156_s27  ;;  %s998_s11 = int_to_ptr.vmem [resolvable:$true] %s168_s11 }
  0x48   : > { %s728_s28 = scalar_lea.hbm %s996_s9, 512  ;;  %p1115_p7 = scmp.ne.s32.totalorder %s1114_s30, 0 }
  0x49   : > { %p729_p9 = scmp.ne.s32.totalorder %s996_s9, %s728_s28  ;;  %s733_s19 = scalar_lea.hbm %s1098_s0, 1024 }
  0x4a   : > { %p730_p1 = pneg %p1115_p7  ;;  %p734_p12 = scmp.lt.u32.totalorder %s996_s9, %s1098_s0 }
  0x4b   : > { %p735_p13 = scmp.lt.u32.totalorder %s733_s19, %s728_s28  ;;  %p737_p8 = scmp.lt.u32.totalorder %s728_s28, %s996_s9 }
  0x4c   : > { %p731_p6 = pnand %p730_p1, %p729_p9 }
  0x4d   : > { %p736_p3 = por %p735_p13, %p734_p12 }
  0x4e   : > { %p732_p11 = pneg %p731_p6 }
  0x4f   : > { %p738_p4 = por %p737_p8, %p736_p3 }
  0x51   : > { %p739_p5 = pnand %p738_p4, %p732_p11 }
  0x53   : > { %742 = shalt.err (!%p739_p5)
}
  0x54   : > { %s743_s27 = scalar_lea.vmem %s998_s11, 512  ;;  %s834_s4 = smov [#allocation2]  }
  0x55   : > { %p744_p10 = scmp.ne.s32.totalorder %s998_s11, %s743_s27  ;;  %s748_s6 = sshll.u32 %s834_s4, 4  ;;  %s749_s6 = int_to_ptr.vmem [resolvable:$false] %s748_s6 }
  0x56   : > { %s750_s7 = scalar_lea.vmem %s749_s6, 1024  ;;  %p751_p9 = scmp.lt.s32.totalorder %s998_s11, %s749_s6 }
  0x57   : > { %p746_p2 = pnand %p744_p10, %p730_p1  ;;  %p752_p6 = scmp.lt.s32.totalorder %s750_s7, %s743_s27 }
  0x59   : > { %p747_p0 = pneg %p746_p2  ;;  %p753_p12 = por %p752_p6, %p751_p9 }
  0x5b   : > { %p754_p13 = pnand %p753_p12, %p747_p0 }
  0x5d   : > { %757 = shalt.err (!%p754_p13)
}
  0x5e   : > { %s835_s8 = smov 128   ;;  %s836_s10 = smov 8  }
  0x5f   : > { %617 = dma.hbm_to_vmem [thread:$0]  (!%p1115_p7), %s996_s9, 512, %s998_s11, %s1000_s29, %s835_s8, %s835_s8, %s836_s10  }
  0x60   : > { %p1116_p1 = scmp.ne.s32.totalorder %s1111_s26, 0 }
  0x61   : > { %s1031_s28 = sand.u32 (!%p1116_p1), 1, %s820_s13   ;;  %p1117_p11 = scmp.ne.s32.totalorder (!%p1116_p1), %s1108_s23, 0 }
  0x62   : > { %180 = sbr.rel (%p1116_p1) target bundleno = 565 (0x235), region = 32  ;;  %s536_s5 = sshll.u32 (!%p1116_p1), %s1031_s28, 5 }
  0x63   : > { %s183_s17 = scalar_lea.sflag (!%p1116_p1), [#allocation3], %s1031_s28  ;;  %s186_s19 = scalar_lea.vmem (!%p1116_p1), [#allocation2], %s536_s5 }
  0x69   : > { %803 = dma.done.wait (%p1117_p11), %s183_s17, 512  }
  0x6a   : > { %805 = vsyncadd (%p1117_p11), %s183_s17, 4294966784  ;;  %p1118_p3 = scmp.eq.s32.totalorder %s883_s16, 0 }
  0x6c   : > { %807 = dma.done.wait (%p1118_p3), [#allocation6], 320   ;;  %p1119_p7 = pmov %p1118_p3 }
  0x6d   : > { %v837_v0 = vmov 0.0   ;;  %vm838_vm0 = vmmov 0   ;;  %v225_v1 = vld [vmem:[%s186_s19] sm:$0xff]  ;;  %v226_v2 = vld [vmem:[%s186_s19 + $0x8] sm:$0xff]  ;;  %v544_v4 = vld [vmem:[%s186_s19 + $0x10] sm:$0xff]  ;;  %vm228_vm1 = vcmask 130048  }
  0x6e   : > { %809 = vsyncadd (%p1119_p7), [#allocation6], 4294966976  ;;  %567 = vmatprep.subr.bf16.mxu0 %v837_v0  ;;  %569 = vmatprep.mubr.msk.bf16.mxu0 %vm838_vm0, %v837_v0  ;;  %v227_v3 = vpack.c.bf16 %v226_v2, %v225_v1  ;;  %v545_v5 = vld [vmem:[%s186_s19 + $0x18] sm:$0xff]  ;;  %v670_v6 = vld [vmem:[#allocation7] sm:$0xff]   ;;  %vm285_vm2 = vcmask 261120   ;;  %s539_s23 = sshll.u32 %s1031_s28, 4 }
  0x6f   : > { %573 = vmatprep.subr.bf16.mxu1 %v837_v0  ;;  %577 = vmatprep.mubr.msk.bf16.mxu1 %vm838_vm0, %v837_v0  ;;  %v220_v7 = vld [vmem:[#allocation5] sm:$0xf]  ;;  %v333_v8 = vpack.c.bf16 %v545_v5, %v544_v4  ;;  %v671_v9 = vld [vmem:[#allocation7 + $0x8] sm:$0xff]   ;;  %s216_s26 = scalar_lea.vmem [#allocation8], %s539_s23  ;;  %s556_s9 = sshll.u32 %s883_s16, 8 }
  0x70   : > { %568 = vmatpush3.bf16.msra.mxu0 %v227_v3  ;;  %574 = vmatpush3.bf16.msra.mxu1 %v670_v6  ;;  %s434_s30 = sshll.u32 %s216_s26, 4  ;;  %s1054_s20 = scalar_lea.hbm %s1101_s3, %s556_s9  ;;  %s1049_s30 = int_to_ptr.vmem [resolvable:$true] %s434_s30 }
  0x71   : > { %581 = vmatprep.subr.bf16.mxu0 %v837_v0  ;;  %575 = vmatprep.subr.bf16.mxu1 %v837_v0  ;;  %s421_s22 = scalar_lea.sflag [#allocation4], %s1031_s28  ;;  %s758_s27 = scalar_lea.vmem %s1049_s30, 256 }
  0x72   : > { %p759_p8 = scmp.ne.s32.totalorder %s1049_s30, %s758_s27  ;;  %p1120_p4 = scmp.ne.s32.totalorder %s1109_s24, 0 }
  0x73   : > { %570 = vmatmul.mubr.msk.bf16.vlgmr.msra.gmra.mrb[0].mxu0 %vm228_vm1, %v220_v7  ;;  %s839_s16 = smov [#allocation8]  }
  0x74   : > { %582 = vmatpush3.bf16.msra.mxu0 %v333_v8  ;;  %583 = vmatprep.mubr.msk.bf16.mxu0 %vm838_vm0, %v837_v0  ;;  %p760_p5 = pnand %p759_p8, %p1120_p4  ;;  %s762_s4 = sshll.u32 %s839_s16, 4  ;;  %s763_s4 = int_to_ptr.vmem [resolvable:$false] %s762_s4 }
  0x75   : > { %576 = vmatpush3.bf16.msra.mxu1 %v671_v9  ;;  %s764_s6 = scalar_lea.vmem %s763_s4, 512  ;;  %p765_p2 = scmp.lt.s32.totalorder %s1049_s30, %s763_s4 }
  0x76   : > { %587 = vmatprep.subr.bf16.mxu1 %v837_v0  ;;  %p761_p10 = pneg %p760_p5  ;;  %p766_p0 = scmp.lt.s32.totalorder %s764_s6, %s758_s27 }
  0x78   : > { %p767_p9 = por %p766_p0, %p765_p2 }
  0x7a   : > { %p768_p6 = pnand %p767_p9, %p761_p10 }
  0x7b   : > { %584 = vmatmul.mubr.msk.bf16.vlgmr.msra.gmra.mrb[4].mxu0 %vm228_vm1, %v220_v7 }
 0x146   : > { %v266_v10 = vpop.f32.mrb[0].mxu0 }
 0x147   : > { %v272_v11 = vpack.c.bf16 %v266_v10, %v266_v10  ;;  %v571_v12 = vpop.f32.mrb[1].mxu0 }
 0x148   : > { %v269_v13 = vpop.f32.mrb[2].mxu0 }
 0x149   : > { %v572_v14 = vpop.f32.mrb[3].mxu0  ;;  %578 = vmatmul.mubr.msk.bf16.vlgmr.msra.gmra.mrb[0].mxu1 %vm285_vm2, %v272_v11 }
 0x14a   : > { %588 = vmatpush3.bf16.msra.mxu1 %v670_v6  ;;  %591 = vmatprep.mubr.msk.bf16.mxu1 %vm838_vm0, %v837_v0 }
 0x14b   : > { %589 = vmatprep.subr.bf16.mxu1 %v837_v0 }
 0x14e   : > { %v368_v15 = vpop.f32.mrb[4].mxu0  ;;  %590 = vmatpush3.bf16.msra.mxu1 %v671_v9 }
 0x14f   : > { %v374_v16 = vpack.c.bf16 %v368_v15, %v368_v15  ;;  %v585_v17 = vpop.f32.mrb[5].mxu0 }
 0x150   : > { %v371_v18 = vpop.f32.mrb[6].mxu0 }
 0x151   : > { %v586_v19 = vpop.f32.mrb[7].mxu0  ;;  %592 = vmatmul.mubr.msk.bf16.vlgmr.msra.gmra.mrb[4].mxu1 %vm285_vm2, %v374_v16 }
 0x21c   : > { %v323_v20 = vpop.f32.mrb[0].mxu1 }
 0x21d   : > { %329 = vst [vmem:[%s216_s26] sm:$0xff] %v323_v20  ;;  %v579_v21 = vpop.f32.mrb[1].mxu1 }
 0x21e   : > { %v326_v22 = vpop.f32.mrb[2].mxu1 }
 0x21f   : > { %v580_v23 = vpop.f32.mrb[3].mxu1 }
 0x224   : > { %v412_v24 = vpop.f32.mrb[4].mxu1 }
 0x225   : > { %548 = vst [vmem:[%s216_s26 + $0x8] sm:$0xff] %v412_v24  ;;  %v593_v25 = vpop.f32.mrb[5].mxu1 }
 0x226   : > { %v415_v26 = vpop.f32.mrb[6].mxu1 }
 0x227   : > { %771 = shalt.err (!%p768_p6)
}
 0x228   : > { %s772_s7 = scalar_lea.hbm %s1054_s20, 256  ;;  %s776_s5 = scalar_lea.hbm %s1101_s3, 512 }
 0x229   : > { %p773_p12 = scmp.ne.s32.totalorder %s1054_s20, %s772_s7  ;;  %p777_p11 = scmp.lt.u32.totalorder %s1054_s20, %s1101_s3 }
 0x22a   : > { %p778_p3 = scmp.lt.u32.totalorder %s776_s5, %s772_s7  ;;  %p780_p8 = scmp.lt.u32.totalorder %s772_s7, %s1054_s20 }
 0x22b   : > { %p774_p13 = pnand %p773_p12, %p1120_p4 }
 0x22c   : > { %p779_p7 = por %p778_p3, %p777_p11 }
 0x22d   : > { %p775_p1 = pneg %p774_p13 }
 0x22e   : > { %p781_p5 = por %p780_p8, %p779_p7 }
 0x230   : > { %p782_p10 = pnand %p781_p5, %p775_p1 }
 0x232   : > { %785 = shalt.err (!%p782_p10)
}
 0x233   : > { %s840_s23 = smov 128   ;;  %s841_s26 = smov 8   ;;  %v594_v27 = vpop.f32.mrb[7].mxu1 }
 0x234   : > { %605 = dma.vmem_to_hbm [thread:$0]  (%p1120_p4), %s1049_s30, 256, %s1054_s20, %s421_s22, %s840_s23, %s840_s23, %s841_s26  }
 0x235 PF: > { %s449_s9 = sand.u32 1, %s816_s12   ;;  %p1121_p2 = scmp.ne.s32.totalorder %s1110_s25, 0 }
 0x236   : > { %p1122_p0 = scmp.ge.s32.totalorder %s828_s15, 2  ;;  %s450_s11 = scalar_lea.sflag [#allocation4], %s449_s9 }
 0x238   : > { %p619_p9 = pnand %p1122_p0, %p1121_p2 }
 0x23a   : > { %811 = dma.done.wait (!%p619_p9), %s450_s11, 256  }
 0x23b   : > { %813 = vsyncadd (!%p619_p9), %s450_s11, 4294967040  ;;  %p17_p6 = scmp.ge.s32.totalorder %s887_s18, 4   ;;  %s1123_s12 = smov %s820_s13 }
 0x23c   : > { %s1124_s13 = smov %s824_s14  ;;  %s1125_s14 = smov %s899_s21 }
 0x23d   : > { %s1126_s15 = smov %s887_s18  ;;  %19 = sbr.rel (!%p17_p6) target bundleno = 6 (0x6), region = 87 }
 0x244   :  { %455 = vsyncpa [#allocation3], 1 }
 0x245   :  { %457 = vsyncpa [#allocation3 + $0x1], 1 }
 0x246   :  { %458 = vsyncpa [#allocation6], 1 }
 0x247   :  { %459 = vsyncpa [#allocation4], 1 }
 0x248   :  { %461 = vsyncpa [#allocation4 + $0x1], 1 }

</bundles_post_ra>
